<compile_context>
chip_gen: v6e
topology: v6e:2x2x1
jax: 0.10.0
libtpu: 0.0.40
codegen_flags: <defaults>
</compile_context>

<pallas_src>
from functools import partial

import numpy as np
import jax
import jax.numpy as jnp
from jax.experimental import pallas as pl
from jax.experimental.pallas import tpu as pltpu

_LANES = 128
_ROW_ALIGN = 16          # bf16 sublane packing -> keep every block 16-row aligned
_MAX_TILE_ROWS = 4096    # per review: 2048-4096 rows per grid step


def _round_up(x, m):
    return -(-x // m) * m


def _slab_layout(din_pad, lanes=_LANES):
    """Row offsets of the packed parameter slab (all blocks 16-row aligned)."""
    r_w1 = 0
    r_b1 = din_pad
    r_w2 = r_b1 + _ROW_ALIGN
    r_b2 = r_w2 + lanes
    r_w3 = r_b2 + _ROW_ALIGN
    r_b3 = r_w3 + lanes
    rows = r_b3 + _ROW_ALIGN
    return r_w1, r_b1, r_w2, r_b2, r_w3, r_b3, rows


# -----------------------------------------------------------------------------
# Kernel
# -----------------------------------------------------------------------------
def _make_kernel(din_pad, action_size, out_lanes, lanes=_LANES):
    """Fused mu/v MLP forward on one [TILE_N, din_pad] activation tile."""
    _, r_b1, r_w2, r_b2, r_w3, r_b3, _ = _slab_layout(din_pad, lanes)

    def kernel(x_ref, p_ref, out_ref):
        x = x_ref[...]                                        # [TILE_N, din_pad] bf16

        # Layer 1: bf16 x bf16 on the MXU, f32 accumulate / bias / tanh.
        w1 = p_ref[0:din_pad, :]                              # [din_pad, 128] bf16
        b1 = p_ref[r_b1:r_b1 + 1, :].astype(jnp.float32)      # [1, 128]
        h = jnp.tanh(jnp.dot(x, w1, preferred_element_type=jnp.float32) + b1)

        # Layer 2 (block-diagonal): keep activations f32.
        w2 = p_ref[r_w2:r_w2 + lanes, :].astype(jnp.float32)  # [128, 128]
        b2 = p_ref[r_b2:r_b2 + 1, :].astype(jnp.float32)
        h = jnp.tanh(jnp.dot(h, w2, preferred_element_type=jnp.float32) + b2)

        # Layer 3: mu -> lanes [0, A), v -> lane A.
        w3 = p_ref[r_w3:r_w3 + lanes, :].astype(jnp.float32)  # [128, 128]
        b3 = p_ref[r_b3:r_b3 + 1, :].astype(jnp.float32)
        z = jnp.dot(h, w3, preferred_element_type=jnp.float32) + b3

        # Narrow output block: mu lanes get the output tanh, v lane stays
        # linear, padding lanes are exactly zero either way.
        zn = z[:, :out_lanes]
        lane = jax.lax.broadcasted_iota(jnp.int32, zn.shape, 1)
        out_ref[...] = jnp.where(lane < action_size, jnp.tanh(zn), zn)

    return kernel


def _select_tiles(n):
    """Adaptive tiling: big tiles, >=2 tiles (v7x megacore), bounded padding."""
    n_al = _round_up(max(int(n), 1), _ROW_ALIGN)
    num_tiles = -(-n_al // _MAX_TILE_ROWS)
    if n_al >= 2 * _ROW_ALIGN:
        num_tiles = max(num_tiles, 2)      # shard across both v7x TensorCores
    tile_n = _round_up(-(-n_al // num_tiles), _ROW_ALIGN)
    n_pad = tile_n * num_tiles             # waste bounded to <16 rows per tile
    return tile_n, n_pad


def _vmem_limit_bytes(tile_n, din_pad, slab_rows, out_lanes):
    x_tile = tile_n * din_pad * 2          # bf16
    out_tile = tile_n * out_lanes * 4      # f32
    slab = slab_rows * _LANES * 2          # bf16
    inter = 8 * tile_n * _LANES * 4        # generous bound on f32 intermediates
    need = 2 * (x_tile + out_tile + slab) + inter + (4 << 20)
    # Floor at 32 MiB (>= every generation's scoped default), cap at 48 MiB
    # (safely under v7x's 64 MiB physical VMEM).
    return int(min(48 << 20, max(need, 32 << 20)))


def _run_fused(x_pad, slab, tile_n, din_pad, action_size, out_lanes):
    n_pad = x_pad.shape[0]
    rows = slab.shape[0]
    grid = (n_pad // tile_n,)
    return pl.pallas_call(
        _make_kernel(din_pad, action_size, out_lanes),
        grid=grid,
        in_specs=[
            pl.BlockSpec((tile_n, din_pad), lambda i: (i, 0)),   # pipelined x
            pl.BlockSpec((rows, _LANES), lambda i: (0, 0)),      # resident slab
        ],
        out_specs=pl.BlockSpec((tile_n, out_lanes), lambda i: (i, 0)),
        out_shape=jax.ShapeDtypeStruct((n_pad, out_lanes), jnp.float32),
        compiler_params=pltpu.CompilerParams(
            dimension_semantics=("parallel",),
            vmem_limit_bytes=_vmem_limit_bytes(tile_n, din_pad, rows, out_lanes)),
    )(x_pad, slab)


# -----------------------------------------------------------------------------
# Parameters
# -----------------------------------------------------------------------------
def _init_linear(key, fan_in, fan_out):
    """PyTorch-style Linear init: U(-1/sqrt(fan_in), +1/sqrt(fan_in))."""
    kw, kb = jax.random.split(key)
    bound = 1.0 / np.sqrt(fan_in)
    w = jax.random.uniform(kw, (fan_in, fan_out), jnp.float32, -bound, bound)
    b = jax.random.uniform(kb, (1, fan_out), jnp.float32, -bound, bound)
    return w, b


def _pack_params(mu_params, v_params, din_pad, action_size, lanes=_LANES):
    """Pack both heads into one 16-row-aligned bf16 slab (host-side, once)."""
    w1m, b1m, w2m, b2m, w3m, b3m = (np.asarray(a, np.float32) for a in mu_params)
    w1v, b1v, w2v, b2v, w3v, b3v = (np.asarray(a, np.float32) for a in v_params)
    din = w1m.shape[0]
    h1 = w1m.shape[1]
    h2 = w2m.shape[1]
    assert 2 * h1 <= lanes and 2 * h2 <= lanes and action_size + 1 <= lanes, (
        "fused hidden / output width must fit in 128 lanes")

    _, r_b1, r_w2, r_b2, r_w3, r_b3, rows = _slab_layout(din_pad, lanes)
    slab = np.zeros((rows, lanes), np.float32)

    # Layer 1: lanes [0,h1) = mu hidden1, lanes [h1,2h1) = v hidden1.
    slab[0:din, 0:h1] = w1m
    slab[0:din, h1:2 * h1] = w1v
    slab[r_b1, 0:h1] = b1m[0]
    slab[r_b1, h1:2 * h1] = b1v[0]

    # Layer 2: block-diagonal.
    slab[r_w2:r_w2 + h1, 0:h2] = w2m
    slab[r_w2 + h1:r_w2 + 2 * h1, h2:2 * h2] = w2v
    slab[r_b2, 0:h2] = b2m[0]
    slab[r_b2, h2:2 * h2] = b2v[0]

    # Layer 3: mu -> lanes [0,A), v -> lane A.
    slab[r_w3:r_w3 + h2, 0:action_size] = w3m
    slab[r_w3 + h2:r_w3 + 2 * h2, action_size:action_size + 1] = w3v
    slab[r_b3, 0:action_size] = b3m[0]
    slab[r_b3, action_size] = b3v[0, 0]

    return jnp.asarray(slab).astype(jnp.bfloat16)


def make_mujoco_ff_params(key, observation_shape, action_size,
                          hidden_sizes=None, init_log_std=0.0):
    hidden_sizes = hidden_sizes or (64, 64)
    input_size = int(np.prod(observation_shape))
    h1, h2 = hidden_sizes
    keys = jax.random.split(key, 6)
    # mu MLP: input -> h1 -> h2 -> action_size
    mu = (*_init_linear(keys[0], input_size, h1),
          *_init_linear(keys[1], h1, h2),
          *_init_linear(keys[2], h2, action_size))
    # v MLP: input -> h1 -> h2 -> 1
    v = (*_init_linear(keys[3], input_size, h1),
         *_init_linear(keys[4], h1, h2),
         *_init_linear(keys[5], h2, 1))
    din_pad = _round_up(input_size, _ROW_ALIGN)
    packed = _pack_params(mu, v, din_pad, action_size)
    log_std = jnp.full((action_size,), init_log_std, jnp.float32)
    return {
        "mu": mu,
        "v": v,
        "packed": packed,
        "log_std": log_std,
        "action_size": action_size,
        "obs_dim": input_size,
        "din_pad": din_pad,
    }


# -----------------------------------------------------------------------------
# Forward (mirrors MujocoFfModel.forward; lead dims [], [B], or [T,B])
# -----------------------------------------------------------------------------
@partial(jax.jit, static_argnames=("action_size", "obs_dim", "din_pad", "lead_shape"))
def _forward_impl(packed, log_std, observation, *, action_size, obs_dim,
                  din_pad, lead_shape):
    n = int(np.prod(lead_shape)) if lead_shape else 1
    x = observation.reshape(n, obs_dim).astype(jnp.bfloat16)
    if din_pad != obs_dim:
        x = jnp.pad(x, ((0, 0), (0, din_pad - obs_dim)))

    tile_n, n_pad = _select_tiles(n)
    if n_pad != n:
        x = jnp.pad(x, ((0, n_pad - n), (0, 0)))

    out_lanes = _round_up(action_size + 1, 8)
    out = _run_fused(x, packed, tile_n, din_pad, action_size, out_lanes)

    mu = out[:n, :action_size]
    v = out[:n, action_size]
    log_std_b = jnp.broadcast_to(log_std, (n, action_size))

    # restore_leading_dims
    mu = mu.reshape(lead_shape + (action_size,))
    log_std_b = log_std_b.reshape(lead_shape + (action_size,))
    v = v.reshape(lead_shape)
    return mu, log_std_b, v


def mujoco_ff_forward(params, observation, prev_action=None, prev_reward=None,
                      obs_ndim=1):
    del prev_action, prev_reward  # unused, as in the reference model
    lead_shape = tuple(observation.shape[: observation.ndim - obs_ndim])
    return _forward_impl(params["packed"], params["log_std"], observation,
                         action_size=params["action_size"],
                         obs_dim=params["obs_dim"],
                         din_pad=params["din_pad"],
                         lead_shape=lead_shape)


# -----------------------------------------------------------------------------
if __name__ == "__main__":
    key = jax.random.PRNGKey(0)
    k_obs, k_act, k_rew, k_par, k_obs2 = jax.random.split(key, 5)

    T, B = 2, 4
    obs_dim = 16
    action_size = 4
    hidden_sizes = (32, 32)

    observation = jax.random.normal(k_obs, (T, B, obs_dim), jnp.float32)
    prev_action = jax.random.normal(k_act, (T, B, action_size), jnp.float32)
    prev_reward = jax.random.normal(k_rew, (T, B), jnp.float32)

    params = make_mujoco_ff_params(k_par, (obs_dim,), action_size,
                                   hidden_sizes=hidden_sizes, init_log_std=0.0)

    mu, log_std, v = mujoco_ff_forward(params, observation,
                                       prev_action, prev_reward, obs_ndim=1)
    jax.block_until_ready((mu, log_std, v))

    assert mu.shape == (T, B, action_size)
    assert log_std.shape == (T, B, action_size)
    assert v.shape == (T, B)

    # Plain-JAX reference reproducing the kernel's precision path
    # (bf16-rounded weights/biases/x, f32 accumulation / bias / tanh).
    def ref_heads(p, obs2d):
        cast = lambda a: jnp.asarray(a, jnp.float32).astype(jnp.bfloat16)
        up = lambda a: cast(a).astype(jnp.float32)
        xb = cast(obs2d)

        def head(w1, b1, w2, b2, w3, b3, final_tanh):
            h = jnp.tanh(jnp.dot(xb, cast(w1),
                                 preferred_element_type=jnp.float32) + up(b1))
            h = jnp.tanh(jnp.dot(h, up(w2),
                                 preferred_element_type=jnp.float32) + up(b2))
            z = jnp.dot(h, up(w3), preferred_element_type=jnp.float32) + up(b3)
            return jnp.tanh(z) if final_tanh else z

        mu_r = head(*p["mu"], True)
        v_r = head(*p["v"], False)[:, 0]
        return mu_r, v_r

    mu_ref, v_ref = ref_heads(params, observation.reshape(T * B, obs_dim))
    np.testing.assert_allclose(np.asarray(mu).reshape(T * B, action_size),
                               np.asarray(mu_ref), atol=1e-4, rtol=1e-4)
    np.testing.assert_allclose(np.asarray(v).reshape(T * B),
                               np.asarray(v_ref), atol=1e-4, rtol=1e-4)

    # Larger batch exercises the multi-tile path (>=2 parallel tiles, 2048 rows).
    T2, B2 = 16, 256
    obs2 = jax.random.normal(k_obs2, (T2, B2, obs_dim), jnp.float32)
    mu2, ls2, v2 = mujoco_ff_forward(params, obs2, None, None, obs_ndim=1)
    jax.block_until_ready((mu2, ls2, v2))
    assert mu2.shape == (T2, B2, action_size) and v2.shape == (T2, B2)
    mu2_ref, v2_ref = ref_heads(params, obs2.reshape(T2 * B2, obs_dim))
    np.testing.assert_allclose(np.asarray(mu2).reshape(-1, action_size),
                               np.asarray(mu2_ref), atol=1e-4, rtol=1e-4)
    np.testing.assert_allclose(np.asarray(v2).reshape(-1),
                               np.asarray(v2_ref), atol=1e-4, rtol=1e-4)

    print("KERNEL_OK")
</pallas_src>

<mosaic_0001>
module attributes {stable_mosaic.version = 11 : i64} {
  func.func @kernel(%arg0: i32, %arg1: memref<16x16xbf16, #tpu.memory_space<vmem>>, %arg2: memref<320x128xbf16, #tpu.memory_space<vmem>>, %arg3: memref<16x8xf32, #tpu.memory_space<vmem>>) attributes {dimension_semantics = [#tpu.dimension_semantics<parallel>], iteration_bounds = array<i64: 1>, scalar_prefetch = 0 : i64, scratch_operands = 0 : i64, tpu.core_type = #tpu.core_type<tc>, window_params = [{transform_indices = @transform_0, window_bounds = array<i64: 16, 16>}, {pipeline_mode = #tpu.pipeline_mode<synchronous>, transform_indices = @transform_1, window_bounds = array<i64: 320, 128>}, {transform_indices = @transform_2, window_bounds = array<i64: 16, 8>}]} {
    %c0 = arith.constant 0 : index
    %c0_0 = arith.constant 0 : index
    %0 = vector.load %arg1[%c0, %c0_0] : memref<16x16xbf16, #tpu.memory_space<vmem>>, vector<16x16xbf16>
    %c0_1 = arith.constant 0 : index
    %c0_2 = arith.constant 0 : index
    %1 = vector.load %arg2[%c0_1, %c0_2] : memref<320x128xbf16, #tpu.memory_space<vmem>>, vector<16x128xbf16>
    %c16 = arith.constant 16 : index
    %c0_3 = arith.constant 0 : index
    %2 = vector.load %arg2[%c16, %c0_3] : memref<320x128xbf16, #tpu.memory_space<vmem>>, vector<1x128xbf16>
    %3 = arith.extf %2 : vector<1x128xbf16> to vector<1x128xf32>
    %cst = arith.constant dense<0.000000e+00> : vector<16x128xf32>
    %4 = tpu.matmul %0, %1, %cst {dimension_numbers = #tpu.dot_dimension_numbers<[1], [0], [0], [1], [0, 0, 1, 1], [], []>} : vector<16x16xbf16>, vector<16x128xbf16>, vector<16x128xf32> -> vector<16x128xf32>
    %5 = vector.broadcast %3 : vector<1x128xf32> to vector<16x128xf32>
    %6 = arith.addf %4, %5 : vector<16x128xf32>
    %7 = math.tanh %6 : vector<16x128xf32>
    %c32 = arith.constant 32 : index
    %c0_4 = arith.constant 0 : index
    %8 = vector.load %arg2[%c32, %c0_4] : memref<320x128xbf16, #tpu.memory_space<vmem>>, vector<128x128xbf16>
    %9 = arith.extf %8 : vector<128x128xbf16> to vector<128x128xf32>
    %c160 = arith.constant 160 : index
    %c0_5 = arith.constant 0 : index
    %10 = vector.load %arg2[%c160, %c0_5] : memref<320x128xbf16, #tpu.memory_space<vmem>>, vector<1x128xbf16>
    %11 = arith.extf %10 : vector<1x128xbf16> to vector<1x128xf32>
    %cst_6 = arith.constant dense<0.000000e+00> : vector<16x128xf32>
    %12 = tpu.matmul %7, %9, %cst_6 {dimension_numbers = #tpu.dot_dimension_numbers<[1], [0], [0], [1], [0, 0, 1, 1], [], []>} : vector<16x128xf32>, vector<128x128xf32>, vector<16x128xf32> -> vector<16x128xf32>
    %13 = vector.broadcast %11 : vector<1x128xf32> to vector<16x128xf32>
    %14 = arith.addf %12, %13 : vector<16x128xf32>
    %15 = math.tanh %14 : vector<16x128xf32>
    %c176 = arith.constant 176 : index
    %c0_7 = arith.constant 0 : index
    %16 = vector.load %arg2[%c176, %c0_7] : memref<320x128xbf16, #tpu.memory_space<vmem>>, vector<128x128xbf16>
    %17 = arith.extf %16 : vector<128x128xbf16> to vector<128x128xf32>
    %c304 = arith.constant 304 : index
    %c0_8 = arith.constant 0 : index
    %18 = vector.load %arg2[%c304, %c0_8] : memref<320x128xbf16, #tpu.memory_space<vmem>>, vector<1x128xbf16>
    %19 = arith.extf %18 : vector<1x128xbf16> to vector<1x128xf32>
    %cst_9 = arith.constant dense<0.000000e+00> : vector<16x128xf32>
    %20 = tpu.matmul %15, %17, %cst_9 {dimension_numbers = #tpu.dot_dimension_numbers<[1], [0], [0], [1], [0, 0, 1, 1], [], []>} : vector<16x128xf32>, vector<128x128xf32>, vector<16x128xf32> -> vector<16x128xf32>
    %21 = vector.broadcast %19 : vector<1x128xf32> to vector<16x128xf32>
    %22 = arith.addf %20, %21 : vector<16x128xf32>
    %23 = vector.extract_strided_slice %22 {offsets = [0, 0], sizes = [16, 8], strides = [1, 1]} : vector<16x128xf32> to vector<16x8xf32>
    %24 = tpu.iota {dimensions = array<i32: 1>} : vector<16x8xi32>
    %c4_i32 = arith.constant 4 : i32
    %25 = vector.broadcast %c4_i32 : i32 to vector<16x8xi32>
    %26 = arith.cmpi slt, %24, %25 : vector<16x8xi32>
    %27 = math.tanh %23 : vector<16x8xf32>
    %28 = arith.select %26, %27, %23 : vector<16x8xi1>, vector<16x8xf32>
    %c0_10 = arith.constant 0 : index
    %c0_11 = arith.constant 0 : index
    %29 = vector.load %arg3[%c0_10, %c0_11] : memref<16x8xf32, #tpu.memory_space<vmem>>, vector<16x8xf32>
    tpu.vector_store %arg3[%c0_10, %c0_11], %28 {strides = array<i32>} : memref<16x8xf32, #tpu.memory_space<vmem>>, vector<16x8xf32>,
    return
  }
  func.func @transform_0(%arg0: i32) -> (i32, i32) {
    %c0_i32 = arith.constant 0 : i32
    %c0_i32_0 = arith.constant 0 : i32
    return %arg0, %c0_i32 : i32, i32
  }
  func.func @transform_1(%arg0: i32) -> (i32, i32) {
    %c0_i32 = arith.constant 0 : i32
    %c0_i32_0 = arith.constant 0 : i32
    %c0_i32_1 = arith.constant 0 : i32
    return %c0_i32, %c0_i32_0 : i32, i32
  }
  func.func @transform_2(%arg0: i32) -> (i32, i32) {
    %c0_i32 = arith.constant 0 : i32
    %c0_i32_0 = arith.constant 0 : i32
    return %arg0, %c0_i32 : i32, i32
  }
}

</mosaic_0001>

<bundles_post_ra>
// kernel: squeeze.1
= control target key start
LH: loop header
LB: loop body
LE: loop exit
PB: predicated region body
PF: predicated region fallthrough
CT: control target
= control target key end

     0   :  { %s77_s0 = inlined_call_operand.vmem [shape: f32[8], index: 0, kind: input, shape index: {}]   ;;  %s78_s1 = inlined_call_operand.hbm [shape: f32[2,4], index: 1, kind: output, shape index: {}]  }
   0x1   :  { %v6_v0 = vld [vmem:[%s77_s0] sm:$0x1] }
   0x2   :  { %2 = vsyncpa [#allocation1], 0  ;;  %7 = vst [vmem:[#allocation3] sm:$0x1] %v6_v0  ;;  %vm9_vm0 = vcmask 31744   ;;  %s59_s0 = smov 124  }
   0x3   :  { %s60_s8 = smov [#allocation0]  }
   0x4   :  { %s29_s9 = sshll.u32 %s60_s8, 4  ;;  %s30_s9 = int_to_ptr.vmem [resolvable:$true] %s29_s9 }
   0x5   :  { %s37_s10 = scalar_lea.vmem %s30_s9, 32  ;;  %p42_p1 = scmp.lt.s32.totalorder %s30_s9, %s30_s9 }
   0x6   :  { %p38_p0 = scmp.ne.s32.totalorder %s30_s9, %s37_s10  ;;  %p43_p2 = scmp.lt.s32.totalorder %s37_s10, %s37_s10 }
   0x8   :  { %p44_p3 = por %p43_p2, %p42_p1 }
   0x9   :  { %v11_v1 = vld [vmem:[#allocation3] sm:$0x1]  }
   0xa   :  { %v8_v2 = vld [vmem:[#allocation3] sm:$0x1]   ;;  %12 = vrot.lane.b32.xlu0 %v11_v1, %s59_s0  ;;  %p45_p4 = pnand %p44_p3, %p38_p0 }
   0xb   :  { %10 = vst.msk [vmem:[#allocation2] sm:$0x1] %vm9_vm0, %v8_v2  }
  0x7c   :  { %v13_v3 = vpop.permute.xlu0 %12  }
  0x7d   :  { %16 = vst.msk [vmem:[#allocation2 + $0x1] sm:$0x1] %vm9_vm0, %v13_v3  }
  0x84   :  { %v21_v4 = vld [vmem:[#allocation2] sm:$0x3] }
  0x85   :  { %24 = vst [vmem:[#allocation0] sm:$0x3] %v21_v4 }
  0x86   :  { %48 = shalt.err (!%p45_p4)
}
  0x87   :  { %32 = dma.vmem_to_hbm [thread:$0]  %s30_s9, 32, %s78_s1, [#allocation1]  }
  0x88   :  { %57 = dma.done.wait [#allocation1], 32  }
  0x89   :  { %58 = vsyncadd [#allocation1], 4294967264 }
  0x8a   :  { %34 = vsyncpa [#allocation1], 1 }

// kernel: _forward_impl.1
= control target key start
LH: loop header
LB: loop body
LE: loop exit
PB: predicated region body
PF: predicated region fallthrough
CT: control target
= control target key end

     0   :  { %7 = vsyncpa [#allocation3], 0  ;;  %s575_s9 = smov [#allocation2]   ;;  %s614_s0 = inlined_call_operand.vmem [shape: bf16[16,16], index: 0, kind: input, shape index: {}]   ;;  %s615_s1 = inlined_call_operand.hbm [shape: bf16[320,128], index: 1, kind: input, shape index: {}]   ;;  %s616_s2 = inlined_call_operand.vmem [shape: f32[16,8], index: 2, kind: output, shape index: {}]  }
   0x1   :  { %s15_s10 = sshll.u32 %s575_s9, 4  ;;  %s16_s10 = int_to_ptr.vmem [resolvable:$true] %s15_s10 }
   0x2   :  { %s561_s11 = scalar_lea.vmem %s16_s10, 2560  ;;  %p566_p1 = scmp.lt.s32.totalorder %s16_s10, %s16_s10 }
   0x3   :  { %p562_p0 = scmp.ne.s32.totalorder %s16_s10, %s561_s11  ;;  %p567_p2 = scmp.lt.s32.totalorder %s561_s11, %s561_s11 }
   0x5   :  { %p568_p3 = por %p567_p2, %p566_p1 }
   0x7   :  { %p569_p4 = pnand %p568_p3, %p562_p0 }
   0x9   :  { %572 = shalt.err (!%p569_p4)
}
   0xa   :  { %s576_s12 = smov 64   ;;  %s577_s13 = smov 4  }
   0xb   :  { %21 = dma.hbm_to_vmem [thread:$0]  %s615_s1, 2560, %s16_s10, [#allocation3], %s576_s12, %s576_s12, %s577_s13  }
   0xc   :  { %573 = dma.done.wait [#allocation3], 2560  }
   0xd   :  { %574 = vsyncadd [#allocation3], 4294964736  ;;  %v578_v0 = vmov 0.0   ;;  %vm579_vm0 = vmmov 0   ;;  %v539_v1 = vld [vmem:[#allocation2] sm:$0xff]   ;;  %vm47_vm1 = vcmask 130048   ;;  %v32_v36 = vlaneseq }
   0xe   :  { %458 = vmatprep.subr.bf16.mxu0 %v578_v0  ;;  %460 = vmatprep.mubr.msk.bf16.mxu0 %vm579_vm0, %v578_v0  ;;  %v540_v2 = vld [vmem:[%s614_s0] sm:$0xff]   ;;  %v411_v3 = vld [vmem:[#allocation2 + $0x48] sm:$0xff]   ;;  %v409_v8 = vld [vmem:[#allocation2 + $0x38] sm:$0xff]   ;;  %vm329_vm3 = vcmask 64512  }
   0xf   :  { %459 = vmatpush3.bf16.msra.mxu0 %v539_v1  ;;  %v410_v4 = vld [vmem:[#allocation2 + $0x40] sm:$0xff]   ;;  %v370_v5 = vunpack.c.l.bf16 %v411_v3  ;;  %v371_v6 = vunpack.c.h.bf16 %v411_v3  ;;  %v363_v10 = vunpack.c.h.bf16 %v409_v8  ;;  %v362_v11 = vunpack.c.l.bf16 %v409_v8  ;;  %v408_v12 = vld [vmem:[#allocation2 + $0x30] sm:$0xff]   ;;  %v407_v15 = vld [vmem:[#allocation2 + $0x28] sm:$0xff]  }
  0x10   :  { %v367_v7 = vunpack.c.h.bf16 %v410_v4  ;;  %v366_v9 = vunpack.c.l.bf16 %v410_v4  ;;  %v359_v13 = vunpack.c.h.bf16 %v408_v12  ;;  %v358_v14 = vunpack.c.l.bf16 %v408_v12  ;;  %v406_v18 = vld [vmem:[#allocation2 + $0x20] sm:$0xff]   ;;  %v405_v21 = vld [vmem:[#allocation2 + $0x18] sm:$0xff]   ;;  %v404_v23 = vld [vmem:[#allocation2 + $0x10] sm:$0xff]  }
  0x11   :  { %464 = vmatprep.subr.mxu1 %v371_v6  ;;  %v355_v16 = vunpack.c.h.bf16 %v407_v15  ;;  %v354_v17 = vunpack.c.l.bf16 %v407_v15  ;;  %v351_v19 = vunpack.c.h.bf16 %v406_v18  ;;  %v350_v20 = vunpack.c.l.bf16 %v406_v18  ;;  %v419_v27 = vld [vmem:[#allocation2 + $0x90] sm:$0xff]   ;;  %v418_v28 = vld [vmem:[#allocation2 + $0x88] sm:$0xff]   ;;  %v417_v32 = vld [vmem:[#allocation2 + $0x80] sm:$0xff]  }
  0x12   :  { %461 = vmatmul.mubr.msk.bf16.vlgmr.msra.gmra.mxu0 %vm47_vm1, %v540_v2  ;;  %465 = vmatpush3.msra.mxu1 %v371_v6  ;;  %v347_v22 = vunpack.c.h.bf16 %v405_v21  ;;  %v346_v24 = vunpack.c.l.bf16 %v405_v21  ;;  %v343_v25 = vunpack.c.h.bf16 %v404_v23  ;;  %v342_v26 = vunpack.c.l.bf16 %v404_v23  ;;  %v30_v38 = vld [vmem:[#allocation2 + $0x8] sm:$0x1]  ;;  %v416_v50 = vld [vmem:[#allocation2 + $0x78] sm:$0xff]   ;;  %v415_v53 = vld [vmem:[#allocation2 + $0x70] sm:$0xff]  }
  0x13   :  { %466 = vmatprep.subr.mxu1 %v370_v5  ;;  %v403_v29 = vunpack.c.h.bf16 %v419_v27  ;;  %v402_v30 = vunpack.c.l.bf16 %v419_v27  ;;  %v399_v31 = vunpack.c.h.bf16 %v418_v28  ;;  %v398_v33 = vunpack.c.l.bf16 %v418_v28  ;;  %v414_v56 = vld [vmem:[#allocation2 + $0x68] sm:$0xff]   ;;  %v413_v57 = vld [vmem:[#allocation2 + $0x60] sm:$0xff]   ;;  %v412_v61 = vld [vmem:[#allocation2 + $0x58] sm:$0xff]  }
  0x14   :  { %467 = vmatpush3.msra.mxu1 %v370_v5  ;;  %v395_v34 = vunpack.c.h.bf16 %v417_v32  ;;  %v394_v35 = vunpack.c.l.bf16 %v417_v32  ;;  %v33_v37 = vshrl.u32 %v32_v36, 7  ;;  %v31_v39 = vunpack.c.l.bf16 %v30_v38  ;;  %v126_v1 = vld [vmem:[#allocation2 + $0x50] sm:$0x1] }
  0x15   :  { %468 = vmatprep.subr.mxu1 %v367_v7  ;;  %499 = vmatprep.subr.mxu0 %v403_v29  ;;  %v391_v51 = vunpack.c.h.bf16 %v416_v50  ;;  %v390_v52 = vunpack.c.l.bf16 %v416_v50  ;;  %v387_v54 = vunpack.c.h.bf16 %v415_v53  ;;  %v386_v55 = vunpack.c.l.bf16 %v415_v53 }
  0x16   :  { %469 = vmatpush3.msra.mxu1 %v367_v7  ;;  %500 = vmatpush3.msra.mxu0 %v403_v29  ;;  %v602_v40 = vsub.s32 0, %v33_v37  ;;  %v383_v58 = vunpack.c.h.bf16 %v414_v56  ;;  %v382_v59 = vunpack.c.l.bf16 %v414_v56  ;;  %v379_v60 = vunpack.c.h.bf16 %v413_v57 }
  0x17   :  { %470 = vmatprep.subr.mxu1 %v366_v9  ;;  %501 = vmatprep.subr.mxu0 %v402_v30  ;;  %v378_v62 = vunpack.c.l.bf16 %v413_v57  ;;  %v375_v63 = vunpack.c.h.bf16 %v412_v61  ;;  %v374_v0 = vunpack.c.l.bf16 %v412_v61  ;;  %v127_v2 = vunpack.c.l.bf16 %v126_v1 }
  0x18   :  { %471 = vmatpush3.msra.mxu1 %v366_v9  ;;  %502 = vmatpush3.msra.mxu0 %v402_v30  ;;  %v35_v41 = vrot.slane %v31_v39, %v602_v40 }
  0x19   :  { %472 = vmatprep.subr.mxu1 %v363_v10  ;;  %503 = vmatprep.subr.mxu0 %v399_v31  ;;  %v131_v3 = vrot.slane %v127_v2, %v602_v40 }
  0x1a   :  { %473 = vmatpush3.msra.mxu1 %v363_v10  ;;  %504 = vmatpush3.msra.mxu0 %v399_v31  ;;  %v241_v10 = vld [vmem:[#allocation2 + $0x98] sm:$0x1] }
  0x1b   :  { %474 = vmatprep.subr.mxu1 %v362_v11  ;;  %505 = vmatprep.subr.mxu0 %v398_v33 }
  0x1c   :  { %475 = vmatpush3.msra.mxu1 %v362_v11  ;;  %506 = vmatpush3.msra.mxu0 %v398_v33  ;;  %v242_v11 = vunpack.c.l.bf16 %v241_v10 }
  0x1d   :  { %476 = vmatprep.subr.mxu1 %v359_v13  ;;  %507 = vmatprep.subr.mxu0 %v395_v34 }
  0x1e   :  { %477 = vmatpush3.msra.mxu1 %v359_v13  ;;  %508 = vmatpush3.msra.mxu0 %v395_v34  ;;  %v246_v12 = vrot.slane %v242_v11, %v602_v40 }
  0x1f   :  { %478 = vmatprep.subr.mxu1 %v358_v14  ;;  %509 = vmatprep.subr.mxu0 %v394_v35 }
  0x20   :  { %479 = vmatpush3.msra.mxu1 %v358_v14  ;;  %510 = vmatpush3.msra.mxu0 %v394_v35 }
  0x21   :  { %480 = vmatprep.subr.mxu1 %v355_v16  ;;  %511 = vmatprep.subr.mxu0 %v391_v51 }
  0x22   :  { %481 = vmatpush3.msra.mxu1 %v355_v16  ;;  %512 = vmatpush3.msra.mxu0 %v391_v51 }
  0x23   :  { %482 = vmatprep.subr.mxu1 %v354_v17  ;;  %513 = vmatprep.subr.mxu0 %v390_v52 }
  0x24   :  { %483 = vmatpush3.msra.mxu1 %v354_v17  ;;  %514 = vmatpush3.msra.mxu0 %v390_v52  ;;  %v323_v17 = vand.u32 127, %v32_v36 }
  0x25   :  { %484 = vmatprep.subr.mxu1 %v351_v19  ;;  %515 = vmatprep.subr.mxu0 %v387_v54 }
  0x26   :  { %485 = vmatpush3.msra.mxu1 %v351_v19  ;;  %516 = vmatpush3.msra.mxu0 %v387_v54  ;;  %vm324_vm2 = vcmp.lt.s32.totalorder %v323_v17, 4 }
  0x27   :  { %486 = vmatprep.subr.mxu1 %v350_v20  ;;  %517 = vmatprep.subr.mxu0 %v386_v55 }
  0x28   :  { %487 = vmatpush3.msra.mxu1 %v350_v20  ;;  %518 = vmatpush3.msra.mxu0 %v386_v55 }
  0x29   :  { %488 = vmatprep.subr.mxu1 %v347_v22  ;;  %519 = vmatprep.subr.mxu0 %v383_v58 }
  0x2a   :  { %489 = vmatpush3.msra.mxu1 %v347_v22  ;;  %520 = vmatpush3.msra.mxu0 %v383_v58 }
  0x2b   :  { %490 = vmatprep.subr.mxu1 %v346_v24  ;;  %521 = vmatprep.subr.mxu0 %v382_v59 }
  0x2c   :  { %491 = vmatpush3.msra.mxu1 %v346_v24  ;;  %522 = vmatpush3.msra.mxu0 %v382_v59 }
  0x2d   :  { %492 = vmatprep.subr.mxu1 %v343_v25  ;;  %523 = vmatprep.subr.mxu0 %v379_v60 }
  0x2e   :  { %493 = vmatpush3.msra.mxu1 %v343_v25  ;;  %524 = vmatpush3.msra.mxu0 %v379_v60 }
  0x2f   :  { %494 = vmatprep.subr.mxu1 %v342_v26  ;;  %525 = vmatprep.subr.mxu0 %v378_v62 }
  0x30   :  { %495 = vmatpush3.msra.mxu1 %v342_v26  ;;  %526 = vmatpush3.msra.mxu0 %v378_v62 }
  0x31   :  { %527 = vmatprep.subr.mxu0 %v375_v63 }
  0x32   :  { %528 = vmatpush3.msra.mxu0 %v375_v63 }
  0x33   :  { %529 = vmatprep.subr.mxu0 %v374_v0 }
  0x34   :  { %530 = vmatpush3.msra.mxu0 %v374_v0 }
  0xd2   :  { %v85_v42 = vpop.f32.mrf.mxu0 }
  0xd3   :  { %v86_v43 = vadd.f32 %v85_v42, %v35_v41 }
  0xd4   :  { %v462_v44 = vpop.f32.mrf.mxu0 }
  0xd5   :  { %541 = vtanh.f32 %v86_v43 }
  0xd6   :  { %v88_v45 = vpop.f32.mrf.mxu0 }
  0xd7   :  { %v89_v46 = vadd.f32 %v88_v45, %v35_v41 }
  0xd8   :  { %v463_v47 = vpop.f32.mrf.mxu0 }
  0xd9   :  { %543 = vtanh.f32 %v89_v46 }
  0xe2   :  { %v542_v48 = vpop.eup %541 }
  0xe3   :  { %496 = vmatprep.mubr.f32.mxu1 %v542_v48 }
  0xe6   :  { %v544_v49 = vpop.eup %543 }
  0xe7   :  { %497 = vmatmul.mubr.f32.vlgmr.msra.gmra.mxu1 %v544_v49 }
 0x1a7   :  { %v498_v4 = vpop.f32.mrf.mxu1 }
 0x1a8   :  { %v204_v5 = vadd.f32 %v498_v4, %v131_v3 }
 0x1a9   :  { %v198_v6 = vpop.f32.mrf.mxu1 }
 0x1aa   :  { %v199_v7 = vadd.f32 %v198_v6, %v131_v3 }
 0x1ac   :  { %545 = vtanh.f32 %v199_v7 }
 0x1ad   :  { %547 = vtanh.f32 %v204_v5 }
 0x1b9   :  { %v546_v8 = vpop.eup %545 }
 0x1ba   :  { %v548_v9 = vpop.eup %547  ;;  %531 = vmatprep.mubr.f32.mxu0 %v546_v8 }
 0x1bb   :  { %532 = vmatmul.mubr.f32.vlgmr.msra.gmra.mxu0 %v548_v9 }
 0x27b   :  { %v533_v13 = vpop.f32.mrf.mxu0 }
 0x27c   :  { %v319_v14 = vadd.f32 %v533_v13, %v246_v12 }
 0x27d   :  { %v313_v15 = vpop.f32.mrf.mxu0 }
 0x27e   :  { %549 = vtanh.f32 %v319_v14  ;;  %v314_v16 = vadd.f32 %v313_v15, %v246_v12 }
 0x280   :  { %551 = vtanh.f32 %v314_v16 }
 0x28b   :  { %v550_v18 = vpop.eup %549 }
 0x28c   :  { %v328_v19 = vsel %vm324_vm2, %v550_v18, %v319_v14 }
 0x28d   :  { %v552_v20 = vpop.eup %551  ;;  %331 = vst.msk [vmem:[%s616_s2 + $0x8] sm:$0xff] %vm329_vm3, %v328_v19 }
 0x28e   :  { %v327_v21 = vsel %vm324_vm2, %v552_v20, %v314_v16 }
 0x28f   :  { %330 = vst.msk [vmem:[%s616_s2] sm:$0xff] %vm329_vm3, %v327_v21 }
 0x290   :  { %336 = vsyncpa [#allocation3], 1 }

</bundles_post_ra>
